<compile_context>
chip_gen: v7x
topology: tpu7x:2x2x1
jax: 0.10.0
libtpu: 0.0.40
codegen_flags: <defaults>
</compile_context>

<pallas_src>
import jax
import jax.numpy as jnp
from jax.experimental import pallas as pl
from jax.experimental.pallas import tpu as pltpu

BN_EPS = 1e-5
MAX_TILE_B = 8192          # primary tuning knob; v7x-safe VMEM footprint at this size
_MIN_MULTITILE_B = 256     # below this, use a single full-array tile


def _round_up(x, m):
    return (x + m - 1) // m * m


def _qvalue_kernel(state_ref, action_ref, ws_ref, wa_ref, vec_ref, out_ref):
    # vec_ref: (8, H_pad) packed f32 vectors; row 0 = folded bias, row 1 = wf2 row.
    b_eff = vec_ref[0:1, :]        # (1, H_pad), f32
    wf2_row = vec_ref[1:2, :]      # (1, H_pad), f32 (includes bf2 at the bias unit)

    # Folded first layer: state @ Ws' + action @ Wa' + b_eff
    # (affine1 + BN(eval) folded in). Streamed operands may be bf16; MXU
    # accumulation is f32 via preferred_element_type.
    z1 = (
        jnp.dot(state_ref[...], ws_ref[...], preferred_element_type=jnp.float32)
        + jnp.dot(action_ref[...], wa_ref[...], preferred_element_type=jnp.float32)
        + b_eff
    )
    a1 = jnp.maximum(z1, 0.0)      # ReLU (dropout is identity in eval mode)

    # Output head, lane-dense: (1, H) contracted with (tile_b, H) on H -> (1, tile_b).
    # bf2 arrives through the always-on padded hidden unit baked into b_eff / wf2_row.
    out_ref[...] = jax.lax.dot_general(
        wf2_row, a1,
        dimension_numbers=(((1,), (1,)), ((), ())),
        preferred_element_type=jnp.float32,
    )


def fold_params(p, stream_dtype=jnp.bfloat16):
    """Fold affine1 + BatchNorm (eval) + output bias into two weight matrices
    and one packed f32 vector array, zero-padded to a 128-lane hidden width.
    The streamed matrices are cast to `stream_dtype` (bf16 by default); the
    bias/head vectors stay f32."""
    d_state, hidden = p["wf1_s"].shape
    hidden_pad = _round_up(hidden + 1, 128)  # +1 spare column for the bf2 bias unit

    scale = p["gamma"] * jax.lax.rsqrt(p["var"] + BN_EPS)                       # (1, hidden)
    w_s = (p["w1"] @ p["wf1_s"]) * scale                                        # (d_state, hidden)
    w_a = p["wf1_a"] * scale                                                    # (d_action, hidden)
    b_eff = (p["b1"] @ p["wf1_s"] + p["bf1"] - p["mean"]) * scale + p["beta"]   # (1, hidden)
    wf2_row = p["wf2"].T                                                        # (1, hidden)

    pad = hidden_pad - hidden
    w_s = jnp.pad(w_s, ((0, 0), (0, pad)))
    w_a = jnp.pad(w_a, ((0, 0), (0, pad)))
    b_eff = jnp.pad(b_eff, ((0, 0), (0, pad)))
    wf2_row = jnp.pad(wf2_row, ((0, 0), (0, pad)))

    # Always-on padded hidden unit that carries bf2 through the ReLU exactly:
    # pre-activation = 1.0 (weight columns are zero), relu(1.0)=1.0,
    # contribution to the head = 1.0 * bf2.
    b_eff = b_eff.at[0, hidden].set(1.0)
    wf2_row = wf2_row.at[0, hidden].set(p["bf2"][0, 0])

    vecs = jnp.zeros((8, hidden_pad), jnp.float32)
    vecs = vecs.at[0, :].set(b_eff[0].astype(jnp.float32))
    vecs = vecs.at[1, :].set(wf2_row[0].astype(jnp.float32))

    return {
        "w_s": w_s.astype(stream_dtype),
        "w_a": w_a.astype(stream_dtype),
        "vecs": vecs,
    }


def _choose_tiling(B, max_tile_b):
    """Balanced batch tiling: >=2 tiles once the padded batch reaches 256 rows
    (so v7x megacore has work to shard), tiles a multiple of 128 lanes for the
    lane-dense output row, and tile sizes balanced across tiles to avoid
    padding nearly a whole extra tile of zero rows."""
    b16 = _round_up(B, 16)                 # 16 sublanes so bf16 blocks are well-formed
    if b16 < _MIN_MULTITILE_B:
        return b16, b16, 1                 # single tile; block == full (padded) array
    n_tiles = max(2, pl.cdiv(b16, max_tile_b))
    tile_b = min(max_tile_b, _round_up(pl.cdiv(b16, n_tiles), 128))
    n_tiles = pl.cdiv(b16, tile_b)
    return tile_b, tile_b * n_tiles, n_tiles


def qvalue_forward(state, action, folded, *, max_tile_b=MAX_TILE_B):
    B, d_state = state.shape
    d_action = action.shape[1]
    hidden_pad = folded["w_s"].shape[1]
    stream_dtype = folded["w_s"].dtype

    tile_b, b_pad, num_tiles = _choose_tiling(B, max_tile_b)

    state = state.astype(stream_dtype)
    action = action.astype(stream_dtype)
    if b_pad != B:
        state = jnp.pad(state, ((0, b_pad - B), (0, 0)))
        action = jnp.pad(action, ((0, b_pad - B), (0, 0)))

    out = pl.pallas_call(
        _qvalue_kernel,
        out_shape=jax.ShapeDtypeStruct((1, b_pad), jnp.float32),
        grid_spec=pltpu.PrefetchScalarGridSpec(
            num_scalar_prefetch=0,
            grid=(num_tiles,),
            in_specs=[
                # batch-tiled activations (the only data that scales with B)
                pl.BlockSpec((tile_b, d_state), lambda i: (i, 0)),
                pl.BlockSpec((tile_b, d_action), lambda i: (i, 0)),
                # resident weights / packed vectors (constant index_map)
                pl.BlockSpec((d_state, hidden_pad), lambda i: (0, 0)),
                pl.BlockSpec((d_action, hidden_pad), lambda i: (0, 0)),
                pl.BlockSpec((8, hidden_pad), lambda i: (0, 0)),
            ],
            # lane-dense output row: (1, tile_b) unmasked full-width stores
            out_specs=pl.BlockSpec((1, tile_b), lambda i: (0, i)),
        ),
        compiler_params=pltpu.CompilerParams(
            dimension_semantics=("parallel",),   # shards over v7x's 2 TCs; harmless on v5e/v6e
            vmem_limit_bytes=32 * 1024 * 1024,   # budgeted for v7x's smaller (64 MiB) VMEM
        ),
    )(state, action, folded["w_s"], folded["w_a"], folded["vecs"])

    return out.reshape(-1)[:B].reshape(B, 1)


def make_params(key, d_state, d_action, hidden):
    ks = jax.random.split(key, 8)
    scale = 0.1
    return {
        # affine1: Linear(d_state, d_state); stored transposed as (in, out)
        "w1": scale * jax.random.normal(ks[0], (d_state, d_state), jnp.float32),
        "b1": scale * jax.random.normal(ks[1], (1, d_state), jnp.float32),
        # FeedForward layer 0: Linear(d_state + d_action, hidden), split by input block
        "wf1_s": scale * jax.random.normal(ks[2], (d_state, hidden), jnp.float32),
        "wf1_a": scale * jax.random.normal(ks[3], (d_action, hidden), jnp.float32),
        "bf1": scale * jax.random.normal(ks[4], (1, hidden), jnp.float32),
        # BatchNorm1d(hidden) eval-mode parameters / running stats
        "gamma": 1.0 + 0.05 * jax.random.normal(ks[5], (1, hidden), jnp.float32),
        "beta": 0.05 * jax.random.normal(ks[6], (1, hidden), jnp.float32),
        "mean": 0.05 * jax.random.normal(ks[7], (1, hidden), jnp.float32),
        "var": jnp.ones((1, hidden), jnp.float32),
        # FeedForward output head: Linear(hidden, 1)
        "wf2": scale * jax.random.normal(ks[5], (hidden, 1), jnp.float32),
        "bf2": scale * jax.random.normal(ks[6], (1, 1), jnp.float32),
    }


def reference_forward(state, action, p):
    h = state @ p["w1"] + p["b1"]
    x = jnp.concatenate([h, action], axis=1)
    wf1 = jnp.concatenate([p["wf1_s"], p["wf1_a"]], axis=0)
    z1 = x @ wf1 + p["bf1"]
    z1 = (z1 - p["mean"]) * jax.lax.rsqrt(p["var"] + BN_EPS) * p["gamma"] + p["beta"]
    a1 = jnp.maximum(z1, 0.0)
    return a1 @ p["wf2"] + p["bf2"]


if __name__ == "__main__":
    B, d_state, d_action, hidden = 8, 32, 8, 64

    key = jax.random.PRNGKey(0)
    k_state, k_action, k_params = jax.random.split(key, 3)

    state = jax.random.normal(k_state, (B, d_state), jnp.float32)
    action = jax.random.normal(k_action, (B, d_action), jnp.float32)
    params = make_params(k_params, d_state, d_action, hidden)

    q_ref = reference_forward(state, action, params)

    # 1) f32-streaming path: tight tolerance vs the unfused reference
    folded_f32 = fold_params(params, stream_dtype=jnp.float32)
    q32 = jax.block_until_ready(qvalue_forward(state, action, folded_f32))
    assert q32.shape == (B, 1)
    assert jnp.allclose(q32, q_ref, atol=1e-4, rtol=1e-4), float(jnp.max(jnp.abs(q32 - q_ref)))

    # 2) default bf16-streaming path (perf-review recommendation): bias/head
    #    vectors and accumulation stay f32, so error is only bf16 quantization
    #    of the two streamed matmul operands.
    folded_bf16 = fold_params(params)  # stream_dtype=bf16 (default)
    q16 = jax.block_until_ready(qvalue_forward(state, action, folded_bf16))
    assert q16.shape == (B, 1)
    assert jnp.allclose(q16, q_ref, atol=2e-2, rtol=2e-2), float(jnp.max(jnp.abs(q16 - q_ref)))

    # 3) multi-tile batch to exercise the grid, balanced tiling (2 x 256 tiles)
    #    and padded-row slicing.
    B2 = 300
    k2s, k2a = jax.random.split(jax.random.PRNGKey(1), 2)
    state2 = jax.random.normal(k2s, (B2, d_state), jnp.float32)
    action2 = jax.random.normal(k2a, (B2, d_action), jnp.float32)
    q2 = jax.block_until_ready(qvalue_forward(state2, action2, folded_bf16))
    q2_ref = reference_forward(state2, action2, params)
    assert q2.shape == (B2, 1)
    assert jnp.allclose(q2, q2_ref, atol=2e-2, rtol=2e-2), float(jnp.max(jnp.abs(q2 - q2_ref)))

    print("KERNEL_OK")
</pallas_src>

<mosaic_0001>
module attributes {stable_mosaic.version = 11 : i64} {
  func.func @_qvalue_kernel(%arg0: i32, %arg1: memref<16x32xf32, #tpu.memory_space<vmem>>, %arg2: memref<16x8xf32, #tpu.memory_space<vmem>>, %arg3: memref<32x128xf32, #tpu.memory_space<vmem>>, %arg4: memref<8x128xf32, #tpu.memory_space<vmem>>, %arg5: memref<8x128xf32, #tpu.memory_space<vmem>>, %arg6: memref<1x16xf32, #tpu.memory_space<vmem>>) attributes {dimension_semantics = [#tpu.dimension_semantics<parallel>], iteration_bounds = array<i64: 1>, scalar_prefetch = 0 : i64, scratch_operands = 0 : i64, tpu.core_type = #tpu.core_type<tc>, window_params = [{transform_indices = @transform_0, window_bounds = array<i64: 16, 32>}, {transform_indices = @transform_1, window_bounds = array<i64: 16, 8>}, {pipeline_mode = #tpu.pipeline_mode<synchronous>, transform_indices = @transform_2, window_bounds = array<i64: 32, 128>}, {pipeline_mode = #tpu.pipeline_mode<synchronous>, transform_indices = @transform_3, window_bounds = array<i64: 8, 128>}, {pipeline_mode = #tpu.pipeline_mode<synchronous>, transform_indices = @transform_4, window_bounds = array<i64: 8, 128>}, {transform_indices = @transform_5, window_bounds = array<i64: 1, 16>}]} {
    %c0 = arith.constant 0 : index
    %c0_0 = arith.constant 0 : index
    %0 = vector.load %arg5[%c0, %c0_0] : memref<8x128xf32, #tpu.memory_space<vmem>>, vector<1x128xf32>
    %c1 = arith.constant 1 : index
    %c0_1 = arith.constant 0 : index
    %1 = vector.load %arg5[%c1, %c0_1] : memref<8x128xf32, #tpu.memory_space<vmem>>, vector<1x128xf32>
    %c0_2 = arith.constant 0 : index
    %c0_3 = arith.constant 0 : index
    %2 = vector.load %arg1[%c0_2, %c0_3] : memref<16x32xf32, #tpu.memory_space<vmem>>, vector<16x32xf32>
    %c0_4 = arith.constant 0 : index
    %c0_5 = arith.constant 0 : index
    %3 = vector.load %arg3[%c0_4, %c0_5] : memref<32x128xf32, #tpu.memory_space<vmem>>, vector<32x128xf32>
    %cst = arith.constant dense<0.000000e+00> : vector<16x128xf32>
    %4 = tpu.matmul %2, %3, %cst {dimension_numbers = #tpu.dot_dimension_numbers<[1], [0], [0], [1], [0, 0, 1, 1], [], []>} : vector<16x32xf32>, vector<32x128xf32>, vector<16x128xf32> -> vector<16x128xf32>
    %c0_6 = arith.constant 0 : index
    %c0_7 = arith.constant 0 : index
    %5 = vector.load %arg2[%c0_6, %c0_7] : memref<16x8xf32, #tpu.memory_space<vmem>>, vector<16x8xf32>
    %c0_8 = arith.constant 0 : index
    %c0_9 = arith.constant 0 : index
    %6 = vector.load %arg4[%c0_8, %c0_9] : memref<8x128xf32, #tpu.memory_space<vmem>>, vector<8x128xf32>
    %cst_10 = arith.constant dense<0.000000e+00> : vector<16x128xf32>
    %7 = tpu.matmul %5, %6, %cst_10 {dimension_numbers = #tpu.dot_dimension_numbers<[1], [0], [0], [1], [0, 0, 1, 1], [], []>} : vector<16x8xf32>, vector<8x128xf32>, vector<16x128xf32> -> vector<16x128xf32>
    %8 = arith.addf %4, %7 : vector<16x128xf32>
    %9 = vector.broadcast %0 : vector<1x128xf32> to vector<16x128xf32>
    %10 = arith.addf %8, %9 : vector<16x128xf32>
    %cst_11 = arith.constant 0.000000e+00 : f32
    %11 = vector.broadcast %cst_11 : f32 to vector<16x128xf32>
    %12 = arith.maximumf %10, %11 : vector<16x128xf32>
    %cst_12 = arith.constant dense<0.000000e+00> : vector<1x16xf32>
    %13 = tpu.matmul %1, %12, %cst_12 {dimension_numbers = #tpu.dot_dimension_numbers<[1], [1], [0], [0], [0, 0, 1, 0], [], []>} : vector<1x128xf32>, vector<16x128xf32>, vector<1x16xf32> -> vector<1x16xf32>
    %c0_13 = arith.constant 0 : index
    %c0_14 = arith.constant 0 : index
    %14 = vector.load %arg6[%c0_13, %c0_14] : memref<1x16xf32, #tpu.memory_space<vmem>>, vector<1x16xf32>
    tpu.vector_store %arg6[%c0_13, %c0_14], %13 {strides = array<i32>} : memref<1x16xf32, #tpu.memory_space<vmem>>, vector<1x16xf32>,
    return
  }
  func.func @transform_0(%arg0: i32) -> (i32, i32) {
    %c0_i32 = arith.constant 0 : i32
    %c0_i32_0 = arith.constant 0 : i32
    return %arg0, %c0_i32 : i32, i32
  }
  func.func @transform_1(%arg0: i32) -> (i32, i32) {
    %c0_i32 = arith.constant 0 : i32
    %c0_i32_0 = arith.constant 0 : i32
    return %arg0, %c0_i32 : i32, i32
  }
  func.func @transform_2(%arg0: i32) -> (i32, i32) {
    %c0_i32 = arith.constant 0 : i32
    %c0_i32_0 = arith.constant 0 : i32
    %c0_i32_1 = arith.constant 0 : i32
    return %c0_i32, %c0_i32_0 : i32, i32
  }
  func.func @transform_3(%arg0: i32) -> (i32, i32) {
    %c0_i32 = arith.constant 0 : i32
    %c0_i32_0 = arith.constant 0 : i32
    %c0_i32_1 = arith.constant 0 : i32
    return %c0_i32, %c0_i32_0 : i32, i32
  }
  func.func @transform_4(%arg0: i32) -> (i32, i32) {
    %c0_i32 = arith.constant 0 : i32
    %c0_i32_0 = arith.constant 0 : i32
    %c0_i32_1 = arith.constant 0 : i32
    return %c0_i32, %c0_i32_0 : i32, i32
  }
  func.func @transform_5(%arg0: i32) -> (i32, i32) {
    %c0_i32 = arith.constant 0 : i32
    %c0_i32_0 = arith.constant 0 : i32
    return %c0_i32, %arg0 : i32, i32
  }
}

</mosaic_0001>

<bundles_post_ra>
// kernel: tpu_custom_call.1
= control target key start
LH: loop header
LB: loop body
LE: loop exit
PB: predicated region body
PF: predicated region fallthrough
CT: control target
= control target key end

     0   :  { %10 = vsyncpa [#allocation3], 0  ;;  %s495_s0 = inlined_call_operand.vmem [shape: f32[16,32], index: 0, kind: input, shape index: {}]   ;;  %s496_s1 = inlined_call_operand.vmem [shape: f32[16,8], index: 1, kind: input, shape index: {}]   ;;  %s497_s2 = inlined_call_operand.hbm [shape: f32[32,128], index: 2, kind: input, shape index: {}]   ;;  %s498_s3 = inlined_call_operand.vmem [shape: f32[8,128], index: 3, kind: input, shape index: {}]   ;;  %s499_s4 = inlined_call_operand.vmem [shape: f32[8,128], index: 4, kind: input, shape index: {}]   ;;  %s500_s5 = inlined_call_operand.hbm [shape: f32[1,16], index: 5, kind: output, shape index: {}]  }
   0x1   :  { %11 = vsyncpa [#allocation4], 0  ;;  %s413_s18 = smov [#allocation2]   ;;  %s365_s22 = scalar_lea.hbm %s497_s2, 512 }
   0x2   :  { %s21_s19 = sshll.u32 %s413_s18, 4  ;;  %p366_p0 = scmp.ne.s32.totalorder %s497_s2, %s365_s22  ;;  %s22_s19 = int_to_ptr.vmem [resolvable:$true] %s21_s19 }
   0x3   :  { %p369_p1 = scmp.lt.u32.totalorder %s365_s22, %s497_s2 }
   0x5   :  { %p371_p2 = pnand %p369_p1, %p366_p0 }
   0x7   :  { %374 = shalt.err (!%p371_p2)
}
   0x8   :  { %s375_s27 = scalar_lea.vmem %s22_s19, 512  ;;  %p380_p4 = scmp.lt.s32.totalorder %s22_s19, %s22_s19 }
   0x9   :  { %p376_p3 = scmp.ne.s32.totalorder %s22_s19, %s375_s27  ;;  %p381_p5 = scmp.lt.s32.totalorder %s375_s27, %s375_s27 }
   0xb   :  { %p382_p6 = por %p381_p5, %p380_p4 }
   0xd   :  { %p383_p7 = pnand %p382_p6, %p376_p3 }
   0xf   :  { %386 = shalt.err (!%p383_p7)
}
  0x10   :  { %s414_s28 = smov 128   ;;  %s415_s29 = smov 8  }
  0x11   :  { %27 = dma.hbm_to_vmem [thread:$0]  %s497_s2, 512, %s22_s19, [#allocation3], %s414_s28, %s414_s28, %s415_s29  }
  0x12   :  { %409 = dma.done.wait [#allocation3], 512  }
  0x13   :  { %410 = vsyncadd [#allocation3], 4294966784  ;;  %vm46_vm0 = vcmask 64512   ;;  %v45_v0 = vld [vmem:[%s498_s3] sm:$0xff]  ;;  %v44_v2 = vld [vmem:[%s496_s1 + $0x8] sm:$0xff]  ;;  %vm128_vm1 = vcmask 261120  }
  0x14   :  { %v43_v1 = vld [vmem:[%s496_s1] sm:$0xff]  ;;  %322 = vmatprep.subr.mxu0 %v45_v0  ;;  %v40_v4 = vld [vmem:[#allocation2 + $0x8] sm:$0xff]  ;;  %v41_v5 = vld [vmem:[#allocation2 + $0x10] sm:$0xff]  ;;  %v416_v11 = vmov 0.0|0.0   ;;  %vm417_vm2 = vmmov 0   ;;  %v418_v12 = vmov 0.0  }
  0x15   :  { %324 = vmatprep.mubr.msk.f32.mxu0 %vm46_vm0, %v43_v1  ;;  %v39_v3 = vld [vmem:[#allocation2] sm:$0xff]  ;;  %323 = vmatpush3.msra.mxu0 %v45_v0  ;;  %v42_v7 = vld [vmem:[#allocation2 + $0x18] sm:$0xff]  ;;  %v38_v10 = vld [vmem:[%s495_s0 + $0x8] sm:$0xff]  ;;  %s419_s17 = smov [#allocation5]   ;;  %vm288_vm3 = vcmask 122880  }
  0x16   :  { %v345_v6 = vpack.c.bf16 %v40_v4, %v39_v3  ;;  %v37_v8 = vld [vmem:[%s495_s0] sm:$0xff]  ;;  %325 = vmatmul.mubr.msk.f32.vlgmr.msra.gmra.mrb[0].mxu0 %vm46_vm0, %v44_v2  ;;  %v349_v9 = vpack.c.bf16 %v42_v7, %v41_v5  ;;  %353 = vmatprep.subr.bf16.mxu1 %v416_v11  ;;  %s296_s18 = sshll.u32 %s419_s17, 4  ;;  %s297_s18 = int_to_ptr.vmem [resolvable:$true] %s296_s18 }
  0x17   :  { %335 = vmatprep.mubr.msk.f32.mxu0 %vm128_vm1, %v37_v8  ;;  %342 = vmatprep.mubr.msk.f32.mxu1 %vm417_vm2, %v418_v12  ;;  %v309_v13 = vld [vmem:[%s499_s4] ss:$0 sm:$0xff]  ;;  %v36_v21 = vld [vmem:[%s499_s4 + $0x1] sm:$0x1]  ;;  %s387_s19 = scalar_lea.vmem %s297_s18, 16  ;;  %s391_s20 = scalar_lea.vmem %s297_s18, 32 }
  0x18   :  { %346 = vmatprep.subr.bf16.mxu0 %v345_v6  ;;  %p388_p8 = scmp.ne.s32.totalorder %s297_s18, %s387_s19  ;;  %p392_p9 = scmp.lt.s32.totalorder %s297_s18, %s297_s18 }
  0x19   :  { %348 = vmatpush3.bf16.msra.mxu0 %v345_v6  ;;  %p393_p10 = scmp.lt.s32.totalorder %s391_s20, %s387_s19 }
  0x1a   :  { %350 = vmatprep.subr.bf16.mxu0 %v349_v9 }
  0x1b   :  { %p394_p11 = por %p393_p10, %p392_p9 }
  0x1d   :  { %352 = vmatpush3.bf16.msra.mxu0 %v349_v9  ;;  %p395_p12 = pnand %p394_p11, %p388_p8 }
  0x20   :  { %336 = vmatmul.mubr.msk.f32.vlgmr.msra.gmra.mrb[0].mxu0 %vm128_vm1, %v38_v10 }
  0xf3   :  { %v337_v14 = vpop.f32.mrb[0].mxu0 }
  0xf4   :  { %v215_v15 = vadd.f32 %v337_v14, %v309_v13  ;;  %v201_v16 = vpop.f32.mrb[1].mxu0 }
  0xf5   :  { %v214_v17 = vadd.f32 %v309_v13, %v201_v16 }
  0xf6   :  { %v217_v18 = vmax.f32 %v215_v15, 0.0 }
  0xf7   :  { %v216_v19 = vmax.f32 %v214_v17, 0.0 }
  0xf9   :  { %v354_v20 = vpack.c.bf16 %v217_v18, %v216_v19 }
  0xfb   :  { %355 = vmatpush3.bf16.xpose.msra.mxu1 %v354_v20 }
 0x102   :  { %343 = vmatmul.mubr.f32.vlgmr.msra.gmra.mrb[0].mxu1 %v36_v21 }
 0x1d5   :  { %v284_v22 = vpop.f32.mrb[0].mxu1 }
 0x1d6   :  { %v344_v23 = vpop.f32.mrb[1].mxu1  ;;  %289 = vst.msk [vmem:[#allocation5] sm:$0x1] %vm288_vm3, %v284_v22 }
 0x1d7   :  { %398 = shalt.err (!%p395_p12)
}
 0x1d8   :  { %s399_s4 = scalar_lea.hbm %s500_s5, 16 }
 0x1d9   :  { %p400_p13 = scmp.ne.s32.totalorder %s500_s5, %s399_s4  ;;  %p403_p0 = scmp.lt.u32.totalorder %s399_s4, %s500_s5 }
 0x1db   :  { %p405_p1 = pnand %p403_p0, %p400_p13 }
 0x1dd   :  { %408 = shalt.err (!%p405_p1)
}
 0x1de   :  { %299 = dma.vmem_to_hbm [thread:$0]  %s297_s18, 16, %s500_s5, [#allocation4]  }
 0x1df   :  { %411 = dma.done.wait [#allocation4], 16  }
 0x1e0   :  { %412 = vsyncadd [#allocation4], 4294967280 }
 0x1e1   :  { %303 = vsyncpa [#allocation3], 1 }
 0x1e2   :  { %304 = vsyncpa [#allocation4], 1 }

</bundles_post_ra>
